<compile_context>
chip_gen: v6e
topology: v6e:2x2x1
jax: 0.10.0
libtpu: 0.0.40
codegen_flags: <defaults>
</compile_context>

<pallas_src>
import functools

import jax
import jax.numpy as jnp
from jax import lax
from jax.experimental import pallas as pl
from jax.experimental.pallas import tpu as pltpu


# ---------------------------------------------------------------------------
# Hardware helpers
# ---------------------------------------------------------------------------

def _device_kind():
    try:
        return jax.devices()[0].device_kind.lower()
    except Exception:
        return ""


def _is_v5e():
    kind = _device_kind()
    return ("v5 lite" in kind) or ("v5e" in kind) or ("v5litepod" in kind)


def _vmem_budget_bytes():
    # Per-step budget (explicit double-buffered streams + f32 temps) that fits
    # under every generation's *default* scoped VMEM:
    #   v5e: 16 MiB scoped (single vst slot -> keep tiles modest anyway)
    #   v6e: 32 MiB scoped / 128 MiB physical
    #   v7x: 32 MiB scoped /  64 MiB physical
    return (6 << 20) if _is_v5e() else (10 << 20)


def _round_up(x, m):
    return ((x + m - 1) // m) * m


# ---------------------------------------------------------------------------
# Tiling
# ---------------------------------------------------------------------------

def _choose_tile_hw(hw, c, in_itemsize, out_itemsize, n_in, n_out, budget_bytes):
    """Largest lane-dense (multiple-of-128) spatial tile whose *real* per-step
    VMEM footprint fits `budget_bytes`.

    Per spatial column:
      explicit streams, double-buffered : 2 * (n_in*in_sz + n_out*out_sz) * C_pad
      compiler-materialized f32 temps   : ~8 block-sized f32 arrays (single).
    """
    c_pad = _round_up(c, 8)  # sublane padding
    per_col = (2 * (n_in * in_itemsize + n_out * out_itemsize) * c_pad
               + 8 * 4 * c_pad)
    max_tile = max(128, (budget_bytes // per_col) // 128 * 128)
    # No point exceeding the (128-aligned) spatial extent itself.
    # NOTE: when both C and HW are tiny, per-step overhead dominates; packing
    # several N into one block would help but is not needed at these sizes.
    return int(min(max_tile, _round_up(hw, 128)))


# ---------------------------------------------------------------------------
# Kernels
# ---------------------------------------------------------------------------

def _norm_block(v, g_b, b_b, *, eps, use_mxu_reduce, compute_dtype):
    """Channel LayerNorm of one (C, T) block.  Stats in f32 (two-pass,
    centered variance == torch unbiased=False); epilogue in `compute_dtype`.
    g_b / b_b are pre-broadcast (C, T) tensors in compute_dtype."""
    c = v.shape[0]
    v32 = v.astype(jnp.float32)
    inv_c = jnp.float32(1.0 / c)
    if use_mxu_reduce:
        # Offload the channel sums to the (otherwise idle) MXU.
        ones_row = jnp.ones((1, c), jnp.float32)
        mean = jnp.dot(ones_row, v32,
                       preferred_element_type=jnp.float32,
                       precision=lax.Precision.HIGHEST) * inv_c      # (1, T)
        centered = v32 - mean                                        # (C, T)
        var = jnp.dot(ones_row, centered * centered,
                      preferred_element_type=jnp.float32,
                      precision=lax.Precision.HIGHEST) * inv_c       # (1, T)
    else:
        mean = jnp.mean(v32, axis=0, keepdims=True)
        centered = v32 - mean
        var = jnp.mean(centered * centered, axis=0, keepdims=True)
    inv_std = lax.rsqrt(var + jnp.float32(eps))                      # f32
    return (centered.astype(compute_dtype) * inv_std.astype(compute_dtype)
            * g_b + b_b)


def _cd_prenorm_fused_kernel(g_ref, b_ref, x_ref, y_ref, o_ref, *,
                             eps, fn, use_mxu_reduce, compute_dtype):
    """out = fn(norm(x), norm(y)) for one (batch, hw-tile) block."""
    c, t = x_ref.shape
    # Hoist g/b cast + broadcast: once per block, reused for x and y.
    g_b = jnp.broadcast_to(g_ref[...].astype(compute_dtype), (c, t))
    b_b = jnp.broadcast_to(b_ref[...].astype(compute_dtype), (c, t))
    xn = _norm_block(x_ref[...], g_b, b_b, eps=eps,
                     use_mxu_reduce=use_mxu_reduce, compute_dtype=compute_dtype)
    yn = _norm_block(y_ref[...], g_b, b_b, eps=eps,
                     use_mxu_reduce=use_mxu_reduce, compute_dtype=compute_dtype)
    o_ref[...] = fn(xn, yn).astype(o_ref.dtype)


def _cd_norm_pair_kernel(g_ref, b_ref, x_ref, y_ref, xo_ref, yo_ref, *,
                         eps, use_mxu_reduce, compute_dtype):
    """Unfused fallback: emit norm(x) and norm(y) separately."""
    c, t = x_ref.shape
    g_b = jnp.broadcast_to(g_ref[...].astype(compute_dtype), (c, t))
    b_b = jnp.broadcast_to(b_ref[...].astype(compute_dtype), (c, t))
    xo_ref[...] = _norm_block(x_ref[...], g_b, b_b, eps=eps,
                              use_mxu_reduce=use_mxu_reduce,
                              compute_dtype=compute_dtype).astype(xo_ref.dtype)
    yo_ref[...] = _norm_block(y_ref[...], g_b, b_b, eps=eps,
                              use_mxu_reduce=use_mxu_reduce,
                              compute_dtype=compute_dtype).astype(yo_ref.dtype)


# ---------------------------------------------------------------------------
# Spec / layout helpers
# ---------------------------------------------------------------------------

def _prep(x_nchw, y_nchw, g, b, tile_hw):
    N, C, H, W = x_nchw.shape
    HW = H * W
    num_tiles = -(-HW // tile_hw)
    HW_pad = num_tiles * tile_hw
    x3 = x_nchw.reshape(N, C, HW)
    y3 = y_nchw.reshape(N, C, HW)
    if HW_pad != HW:
        pad = ((0, 0), (0, 0), (0, HW_pad - HW))
        x3 = jnp.pad(x3, pad)
        y3 = jnp.pad(y3, pad)
    g2 = g.reshape(C, 1)
    b2 = b.reshape(C, 1)
    return x3, y3, g2, b2, N, C, H, W, HW, HW_pad, num_tiles


def _specs(N, C, tile_hw, num_tiles):
    # Larger axis first so a 2-TensorCore (v7x) split lands on real work even
    # when N == 1 / small.  Both axes independent -> "parallel".
    hw_major = num_tiles >= N
    if hw_major:
        grid = (num_tiles, N)
        data_spec = pl.BlockSpec((None, C, tile_hw), lambda t, n: (n, 0, t))
        param_spec = pl.BlockSpec((C, 1), lambda t, n: (0, 0))
    else:
        grid = (N, num_tiles)
        data_spec = pl.BlockSpec((None, C, tile_hw), lambda n, t: (n, 0, t))
        param_spec = pl.BlockSpec((C, 1), lambda n, t: (0, 0))
    return grid, param_spec, data_spec


def _resolve_flags(C, out_dtype, use_mxu_reduce, bf16_epilogue):
    if use_mxu_reduce is None:
        use_mxu_reduce = C >= 8
    if bf16_epilogue is None:
        bf16_epilogue = (out_dtype == jnp.bfloat16) and not _is_v5e()
    compute_dtype = jnp.bfloat16 if bf16_epilogue else jnp.float32
    return use_mxu_reduce, compute_dtype


# ---------------------------------------------------------------------------
# Public entry points
# ---------------------------------------------------------------------------

def cd_prenorm_fused(x_nchw, y_nchw, g, b, fn, eps=1e-5,
                     use_mxu_reduce=None, bf16_epilogue=None, **kwargs):
    """CD_PreNorm with an elementwise `fn` fused into the Pallas kernel."""
    out_dtype = jnp.result_type(x_nchw.dtype, y_nchw.dtype)
    N, C, H, W = x_nchw.shape
    HW = H * W
    tile_hw = _choose_tile_hw(
        HW, C,
        in_itemsize=max(jnp.dtype(x_nchw.dtype).itemsize,
                        jnp.dtype(y_nchw.dtype).itemsize),
        out_itemsize=jnp.dtype(out_dtype).itemsize,
        n_in=2, n_out=1, budget_bytes=_vmem_budget_bytes())
    x3, y3, g2, b2, N, C, H, W, HW, HW_pad, num_tiles = _prep(
        x_nchw, y_nchw, g, b, tile_hw)
    grid, param_spec, data_spec = _specs(N, C, tile_hw, num_tiles)
    use_mxu_reduce, compute_dtype = _resolve_flags(
        C, out_dtype, use_mxu_reduce, bf16_epilogue)

    kernel = functools.partial(
        _cd_prenorm_fused_kernel, eps=eps,
        fn=lambda a, bb: fn(a, bb, **kwargs),
        use_mxu_reduce=use_mxu_reduce, compute_dtype=compute_dtype)

    out = pl.pallas_call(
        kernel,
        out_shape=jax.ShapeDtypeStruct((N, C, HW_pad), out_dtype),
        grid_spec=pltpu.PrefetchScalarGridSpec(
            num_scalar_prefetch=0,
            grid=grid,
            in_specs=[param_spec, param_spec, data_spec, data_spec],
            out_specs=data_spec,
        ),
        compiler_params=pltpu.CompilerParams(
            dimension_semantics=("parallel", "parallel")),
    )(g2, b2, x3, y3)

    return out[:, :, :HW].reshape(N, C, H, W)


def cd_layernorm_pair(x_nchw, y_nchw, g, b, eps=1e-5,
                      use_mxu_reduce=None, bf16_epilogue=None):
    """Unfused path: returns (norm(x), norm(y)) for arbitrary downstream fn."""
    N, C, H, W = x_nchw.shape
    HW = H * W
    itemsize = max(jnp.dtype(x_nchw.dtype).itemsize,
                   jnp.dtype(y_nchw.dtype).itemsize)
    tile_hw = _choose_tile_hw(
        HW, C, in_itemsize=itemsize, out_itemsize=itemsize,
        n_in=2, n_out=2, budget_bytes=_vmem_budget_bytes())
    x3, y3, g2, b2, N, C, H, W, HW, HW_pad, num_tiles = _prep(
        x_nchw, y_nchw, g, b, tile_hw)
    grid, param_spec, data_spec = _specs(N, C, tile_hw, num_tiles)
    out_dtype = jnp.result_type(x_nchw.dtype, y_nchw.dtype)
    use_mxu_reduce, compute_dtype = _resolve_flags(
        C, out_dtype, use_mxu_reduce, bf16_epilogue)

    kernel = functools.partial(
        _cd_norm_pair_kernel, eps=eps,
        use_mxu_reduce=use_mxu_reduce, compute_dtype=compute_dtype)

    xo, yo = pl.pallas_call(
        kernel,
        out_shape=(jax.ShapeDtypeStruct((N, C, HW_pad), x3.dtype),
                   jax.ShapeDtypeStruct((N, C, HW_pad), y3.dtype)),
        grid_spec=pltpu.PrefetchScalarGridSpec(
            num_scalar_prefetch=0,
            grid=grid,
            in_specs=[param_spec, param_spec, data_spec, data_spec],
            out_specs=[data_spec, data_spec],
        ),
        compiler_params=pltpu.CompilerParams(
            dimension_semantics=("parallel", "parallel")),
    )(g2, b2, x3, y3)

    return (xo[:, :, :HW].reshape(N, C, H, W),
            yo[:, :, :HW].reshape(N, C, H, W))


def cd_prenorm(x, y, g, b, fn, eps=1e-5, fuse_fn=True, **kwargs):
    """CD_PreNorm.forward: x = norm(x); y = norm(y); return fn(x, y, **kwargs).

    fuse_fn=True traces `fn` inside the Pallas kernel — ONLY valid for
    elementwise, shape-preserving fn (per-tile fusion would otherwise be
    silently wrong).  For arbitrary fn (e.g. cross attention) use
    fuse_fn=False: the normalized pair comes from the kernel, fn is plain JAX.
    """
    if fuse_fn:
        return cd_prenorm_fused(x, y, g, b, fn, eps=eps, **kwargs)
    xn, yn = cd_layernorm_pair(x, y, g, b, eps=eps)
    return fn(xn, yn, **kwargs)


# ---------------------------------------------------------------------------
# Reference + self-test
# ---------------------------------------------------------------------------

def _reference_cd_prenorm(x, y, g, b, fn, eps=1e-5):
    """Pure-JAX (f32) reference matching the PyTorch module semantics."""
    g32 = g.astype(jnp.float32)
    b32 = b.astype(jnp.float32)

    def norm(v):
        v = v.astype(jnp.float32)
        mean = jnp.mean(v, axis=1, keepdims=True)
        var = jnp.mean((v - mean) ** 2, axis=1, keepdims=True)  # unbiased=False
        return (v - mean) / jnp.sqrt(var + eps) * g32 + b32

    return fn(norm(x), norm(y))


if __name__ == "__main__":
    key = jax.random.PRNGKey(0)

    def make_case(k, n, c, h, w, dtype):
        kx, ky, kg, kb = jax.random.split(k, 4)
        x = jax.random.normal(kx, (n, c, h, w), dtype=jnp.float32).astype(dtype)
        y = jax.random.normal(ky, (n, c, h, w), dtype=jnp.float32).astype(dtype)
        # Module init is ones/zeros; perturb slightly so the affine broadcast
        # is actually exercised — deterministic, in-script.
        g = (jnp.ones((1, c, 1, 1), jnp.float32)
             + 0.1 * jax.random.normal(kg, (1, c, 1, 1), dtype=jnp.float32))
        b = 0.1 * jax.random.normal(kb, (1, c, 1, 1), dtype=jnp.float32)
        return x, y, g, b

    fn = lambda a, bb: a + bb  # elementwise combine (fused inside the kernel)
    k1, k2, k3 = jax.random.split(key, 3)

    # --- Test 1: module-scale shapes (2,4,16,16), f32; fused + unfused ------
    x, y, g, b = make_case(k1, 2, 4, 16, 16, jnp.float32)
    ref = _reference_cd_prenorm(x, y, g, b, fn)
    out = jax.block_until_ready(cd_prenorm(x, y, g, b, fn, fuse_fn=True))
    assert out.shape == (2, 4, 16, 16)
    assert jnp.allclose(out, ref, atol=1e-5, rtol=1e-5), "fused f32 mismatch"
    out_u = jax.block_until_ready(cd_prenorm(x, y, g, b, fn, fuse_fn=False))
    assert jnp.allclose(out_u, ref, atol=1e-5, rtol=1e-5), "unfused f32 mismatch"

    # --- Test 2: non-128-aligned spatial (15x15) + MXU channel reduction ----
    x, y, g, b = make_case(k2, 1, 64, 15, 15, jnp.float32)
    ref = _reference_cd_prenorm(x, y, g, b, fn)
    out = jax.block_until_ready(cd_prenorm(x, y, g, b, fn, fuse_fn=True))
    assert out.shape == (1, 64, 15, 15)
    assert jnp.allclose(out, ref, atol=2e-4, rtol=2e-4), "padded/MXU mismatch"

    # --- Test 3: bf16 inputs -> f32 stats, bf16 epilogue (v6e/v7x lever) ----
    x, y, g, b = make_case(k3, 2, 64, 16, 16, jnp.bfloat16)
    ref = _reference_cd_prenorm(x, y, g, b, fn)
    out = jax.block_until_ready(cd_prenorm(x, y, g, b, fn, fuse_fn=True))
    assert out.dtype == jnp.bfloat16 and out.shape == (2, 64, 16, 16)
    assert jnp.allclose(out.astype(jnp.float32), ref, atol=8e-2, rtol=8e-2), \
        "bf16 mismatch"

    print("KERNEL_OK")
</pallas_src>

<mosaic_0001>
module attributes {stable_mosaic.version = 11 : i64} {
  func.func @_cd_prenorm_fused_kernel(%arg0: i32, %arg1: i32, %arg2: memref<4x1xf32, #tpu.memory_space<vmem>>, %arg3: memref<4x1xf32, #tpu.memory_space<vmem>>, %arg4: memref<1x4x256xf32, #tpu.memory_space<vmem>>, %arg5: memref<1x4x256xf32, #tpu.memory_space<vmem>>, %arg6: memref<1x4x256xf32, #tpu.memory_space<vmem>>) attributes {dimension_semantics = [#tpu.dimension_semantics<parallel>, #tpu.dimension_semantics<parallel>], iteration_bounds = array<i64: 2, 1>, scalar_prefetch = 0 : i64, scratch_operands = 0 : i64, tpu.core_type = #tpu.core_type<tc>, window_params = [{pipeline_mode = #tpu.pipeline_mode<synchronous>, transform_indices = @transform_0, window_bounds = array<i64: 4, 1>}, {pipeline_mode = #tpu.pipeline_mode<synchronous>, transform_indices = @transform_1, window_bounds = array<i64: 4, 1>}, {transform_indices = @transform_2, window_bounds = array<i64: 1, 4, 256>}, {transform_indices = @transform_3, window_bounds = array<i64: 1, 4, 256>}, {transform_indices = @transform_4, window_bounds = array<i64: 1, 4, 256>}]} {
    %c0 = arith.constant 0 : index
    %c0_0 = arith.constant 0 : index
    %0 = vector.load %arg2[%c0, %c0_0] : memref<4x1xf32, #tpu.memory_space<vmem>>, vector<4x1xf32>
    %1 = vector.shape_cast %0 : vector<4x1xf32> to vector<4x1xf32>
    %2 = vector.broadcast %1 : vector<4x1xf32> to vector<4x256xf32>
    %c0_1 = arith.constant 0 : index
    %c0_2 = arith.constant 0 : index
    %3 = vector.load %arg3[%c0_1, %c0_2] : memref<4x1xf32, #tpu.memory_space<vmem>>, vector<4x1xf32>
    %4 = vector.shape_cast %3 : vector<4x1xf32> to vector<4x1xf32>
    %5 = vector.broadcast %4 : vector<4x1xf32> to vector<4x256xf32>
    %c0_3 = arith.constant 0 : index
    %c0_4 = arith.constant 0 : index
    %c0_5 = arith.constant 0 : index
    %6 = vector.load %arg4[%c0_3, %c0_4, %c0_5] : memref<1x4x256xf32, #tpu.memory_space<vmem>>, vector<1x4x256xf32>
    %7 = vector.shape_cast %6 : vector<1x4x256xf32> to vector<4x256xf32>
    %cst = arith.constant dense<0.000000e+00> : vector<256xf32>
    %8 = vector.multi_reduction <add>, %7, %cst [0] : vector<4x256xf32> to vector<256xf32>
    %9 = vector.shape_cast %8 : vector<256xf32> to vector<1x256xf32>
    %cst_6 = arith.constant 4.000000e+00 : f32
    %10 = vector.broadcast %cst_6 : f32 to vector<1x256xf32>
    %11 = arith.divf %9, %10 : vector<1x256xf32>
    %12 = vector.broadcast %11 : vector<1x256xf32> to vector<4x256xf32>
    %13 = arith.subf %7, %12 : vector<4x256xf32>
    %14 = arith.mulf %13, %13 : vector<4x256xf32>
    %cst_7 = arith.constant dense<0.000000e+00> : vector<256xf32>
    %15 = vector.multi_reduction <add>, %14, %cst_7 [0] : vector<4x256xf32> to vector<256xf32>
    %16 = vector.shape_cast %15 : vector<256xf32> to vector<1x256xf32>
    %cst_8 = arith.constant 4.000000e+00 : f32
    %17 = vector.broadcast %cst_8 : f32 to vector<1x256xf32>
    %18 = arith.divf %16, %17 : vector<1x256xf32>
    %cst_9 = arith.constant 9.99999974E-6 : f32
    %19 = vector.broadcast %cst_9 : f32 to vector<1x256xf32>
    %20 = arith.addf %18, %19 : vector<1x256xf32>
    %21 = math.rsqrt %20 : vector<1x256xf32>
    %22 = vector.broadcast %21 : vector<1x256xf32> to vector<4x256xf32>
    %23 = arith.mulf %13, %22 : vector<4x256xf32>
    %24 = arith.mulf %23, %2 : vector<4x256xf32>
    %25 = arith.addf %24, %5 : vector<4x256xf32>
    %c0_10 = arith.constant 0 : index
    %c0_11 = arith.constant 0 : index
    %c0_12 = arith.constant 0 : index
    %26 = vector.load %arg5[%c0_10, %c0_11, %c0_12] : memref<1x4x256xf32, #tpu.memory_space<vmem>>, vector<1x4x256xf32>
    %27 = vector.shape_cast %26 : vector<1x4x256xf32> to vector<4x256xf32>
    %cst_13 = arith.constant dense<0.000000e+00> : vector<256xf32>
    %28 = vector.multi_reduction <add>, %27, %cst_13 [0] : vector<4x256xf32> to vector<256xf32>
    %29 = vector.shape_cast %28 : vector<256xf32> to vector<1x256xf32>
    %cst_14 = arith.constant 4.000000e+00 : f32
    %30 = vector.broadcast %cst_14 : f32 to vector<1x256xf32>
    %31 = arith.divf %29, %30 : vector<1x256xf32>
    %32 = vector.broadcast %31 : vector<1x256xf32> to vector<4x256xf32>
    %33 = arith.subf %27, %32 : vector<4x256xf32>
    %34 = arith.mulf %33, %33 : vector<4x256xf32>
    %cst_15 = arith.constant dense<0.000000e+00> : vector<256xf32>
    %35 = vector.multi_reduction <add>, %34, %cst_15 [0] : vector<4x256xf32> to vector<256xf32>
    %36 = vector.shape_cast %35 : vector<256xf32> to vector<1x256xf32>
    %cst_16 = arith.constant 4.000000e+00 : f32
    %37 = vector.broadcast %cst_16 : f32 to vector<1x256xf32>
    %38 = arith.divf %36, %37 : vector<1x256xf32>
    %cst_17 = arith.constant 9.99999974E-6 : f32
    %39 = vector.broadcast %cst_17 : f32 to vector<1x256xf32>
    %40 = arith.addf %38, %39 : vector<1x256xf32>
    %41 = math.rsqrt %40 : vector<1x256xf32>
    %42 = vector.broadcast %41 : vector<1x256xf32> to vector<4x256xf32>
    %43 = arith.mulf %33, %42 : vector<4x256xf32>
    %44 = arith.mulf %43, %2 : vector<4x256xf32>
    %45 = arith.addf %44, %5 : vector<4x256xf32>
    %46 = arith.addf %25, %45 : vector<4x256xf32>
    %c0_18 = arith.constant 0 : index
    %c0_19 = arith.constant 0 : index
    %c0_20 = arith.constant 0 : index
    %47 = vector.load %arg6[%c0_18, %c0_19, %c0_20] : memref<1x4x256xf32, #tpu.memory_space<vmem>>, vector<1x4x256xf32>
    %48 = vector.shape_cast %47 : vector<1x4x256xf32> to vector<4x256xf32>
    %49 = vector.shape_cast %46 : vector<4x256xf32> to vector<1x4x256xf32>
    tpu.vector_store %arg6[%c0_18, %c0_19, %c0_20], %49 {strides = array<i32>} : memref<1x4x256xf32, #tpu.memory_space<vmem>>, vector<1x4x256xf32>,
    return
  }
  func.func @transform_0(%arg0: i32, %arg1: i32) -> (i32, i32) {
    %c0_i32 = arith.constant 0 : i32
    %c0_i32_0 = arith.constant 0 : i32
    %c0_i32_1 = arith.constant 0 : i32
    return %c0_i32, %c0_i32_0 : i32, i32
  }
  func.func @transform_1(%arg0: i32, %arg1: i32) -> (i32, i32) {
    %c0_i32 = arith.constant 0 : i32
    %c0_i32_0 = arith.constant 0 : i32
    %c0_i32_1 = arith.constant 0 : i32
    return %c0_i32, %c0_i32_0 : i32, i32
  }
  func.func @transform_2(%arg0: i32, %arg1: i32) -> (i32, i32, i32) {
    %c0_i32 = arith.constant 0 : i32
    %c0_i32_0 = arith.constant 0 : i32
    return %arg0, %c0_i32, %arg1 : i32, i32, i32
  }
  func.func @transform_3(%arg0: i32, %arg1: i32) -> (i32, i32, i32) {
    %c0_i32 = arith.constant 0 : i32
    %c0_i32_0 = arith.constant 0 : i32
    return %arg0, %c0_i32, %arg1 : i32, i32, i32
  }
  func.func @transform_4(%arg0: i32, %arg1: i32) -> (i32, i32, i32) {
    %c0_i32 = arith.constant 0 : i32
    %c0_i32_0 = arith.constant 0 : i32
    return %arg0, %c0_i32, %arg1 : i32, i32, i32
  }
}

</mosaic_0001>

<bundles_post_ra>
// kernel: tpu_custom_call.1
= control target key start
LH: loop header
LB: loop body
LE: loop exit
PB: predicated region body
PF: predicated region fallthrough
CT: control target
= control target key end

     0   :  { %9 = vsyncpa [#allocation3], 0  ;;  %s1000_s0 = inlined_call_operand.vmem [shape: f32[4,1], index: 0, kind: input, shape index: {}]   ;;  %s1001_s1 = inlined_call_operand.vmem [shape: f32[4,1], index: 1, kind: input, shape index: {}]   ;;  %s1002_s2 = inlined_call_operand.hbm [shape: f32[2,4,256], index: 2, kind: input, shape index: {}]   ;;  %s1003_s3 = inlined_call_operand.hbm [shape: f32[2,4,256], index: 3, kind: input, shape index: {}]   ;;  %s1004_s4 = inlined_call_operand.hbm [shape: f32[2,4,256], index: 4, kind: output, shape index: {}]  }
   0x1   :  { %11 = vsyncpa [#allocation3 + $0x1], 0 }
   0x2   :  { %12 = vsyncpa [#allocation6], 0 }
   0x3   :  { %14 = vsyncpa [#allocation6 + $0x1], 0 }
   0x4   :  { %15 = vsyncpa [#allocation4], 0 }
   0x5   :  { %17 = vsyncpa [#allocation4 + $0x1], 0  ;;  %s820_s15 = smov 0   ;;  %s822_s16 = smov 0  }
   0x6   :  { %s824_s17 = smov 0   ;;  %s826_s18 = smov 0  }
   0x7   :  { %s828_s19 = smov 0   ;;  %s830_s20 = smov 0  }
   0x8 LB: > { %s546_s21 = sadd.s32 4294967295, %s788_s20   ;;  %s547_s22 = sadd.s32 4294967294, %s788_s20   ;;  %s788_s20 = sphi %s830_s20, %s23_s20   ;;  %s784_s19 = sphi %s828_s19, %s1016_s19   ;;  %s780_s18 = sphi %s826_s18, %s1015_s18   ;;  %s776_s17 = sphi %s824_s17, %s1014_s17   ;;  %s772_s16 = sphi %s822_s16, %s1013_s16   ;;  %s768_s15 = sphi %s820_s15, %s1012_s15  }
   0x9   : > { %s35_s23 = sadd.s32 1, %s784_s19  ;;  %s86_s24 = sadd.s32 1, %s776_s17 }
   0xa   : > { %p37_p0 = scmp.ge.s32.totalorder %s35_s23, 2  ;;  %p93_p1 = scmp.ne.s32.totalorder %s776_s17, %s772_s16 }
   0xb   : > { %p94_p2 = scmp.eq.s32.totalorder %s788_s20, 0  ;;  %p99_p3 = scmp.ne.s32.totalorder %s772_s16, %s768_s15 }
   0xc   : > { %s1018_s23 = smov (%p37_p0, %s35_s23), 0  ;;  %p100_p5 = scmp.eq.s32.totalorder %s546_s21, 0 }
   0xd   : > { %p861_p4 = por %p94_p2, %p93_p1  ;;  %s81_s26 = ssub.s32 %s784_s19, %s1018_s23 }
   0xe   : > { %p153_p6 = scmp.eq.s32.totalorder %s546_s21, 1  ;;  %p84_p7 = scmp.eq.s32.totalorder %s81_s26, 0 }
   0xf   : > { %p867_p8 = por %p100_p5, %p99_p3  ;;  %p159_p10 = scmp.eq.s32.totalorder %s547_s22, 1 }
  0x10   : > { %p871_p9 = por %p153_p6, %p93_p1  ;;  %p585_p13 = scmp.lt.s32.totalorder %s788_s20, 2 }
  0x11   : > { %s876_s29 = scalar_select %p84_p7, %s776_s17, %s86_s24  }
  0x12   : > { %p878_p11 = por %p159_p10, %p99_p3  ;;  %s885_s5 = sand.u32 1, %s776_s17  }
  0x13   : > { %s550_s6 = sshll.u32 %s885_s5, 3  ;;  %s565_s7 = sshll.u32 %s784_s19, 7 }
  0x14   : > { %s197_s10 = scalar_lea.hbm %s1002_s2, %s565_s7  ;;  %s189_s11 = scalar_lea.vmem [#allocation2], %s550_s6 }
  0x15   : > { %s199_s12 = sshll.u32 %s189_s11, 4  ;;  %p894_p0 = pnand %p585_p13, %p861_p4  ;;  %s200_s12 = int_to_ptr.vmem [resolvable:$true] %s199_s12 }
  0x16   : > { %p556_p1 = scmp.ge.s32.totalorder %s788_s20, 1  ;;  %p225_p2 = scmp.lt.s32.totalorder %s788_s20, 3 }
  0x17   : > { %s186_s14 = scalar_lea.sflag [#allocation3], %s885_s5  ;;  %p650_p3 = pneg %p894_p0 }
  0x18   : > { %s661_s21 = scalar_lea.vmem %s200_s12, 128  ;;  %s790_s22 = smov [#allocation2]  }
  0x19   : > { %p662_p5 = scmp.ne.s32.totalorder %s200_s12, %s661_s21  ;;  %s666_s24 = sshll.u32 %s790_s22, 4  ;;  %s667_s24 = int_to_ptr.vmem [resolvable:$false] %s666_s24 }
  0x1a   : > { %s668_s25 = scalar_lea.vmem %s667_s24, 256  ;;  %p669_p4 = scmp.lt.s32.totalorder %s200_s12, %s667_s24 }
  0x1b   : > { %p664_p6 = pnand %p662_p5, %p650_p3  ;;  %p670_p10 = scmp.lt.s32.totalorder %s668_s25, %s661_s21 }
  0x1d   : > { %p665_p7 = pneg %p664_p6  ;;  %p671_p13 = por %p670_p10, %p669_p4 }
  0x1f   : > { %p672_p12 = pnand %p671_p13, %p665_p7 }
  0x21   : > { %675 = shalt.err (!%p672_p12)
}
  0x22   : > { %577 = dma.hbm_to_vmem [thread:$0]  (!%p894_p0), %s197_s10, 128, %s200_s12, %s186_s14  }
  0x23   : > { %p912_p5 = pnand %p556_p1, %p225_p2  ;;  %s218_s11 = scalar_lea.hbm %s1003_s3, %s565_s7 }
  0x24   : > { %s210_s21 = scalar_lea.vmem [#allocation5], %s550_s6  ;;  %s207_s24 = scalar_lea.sflag [#allocation6], %s885_s5 }
  0x25   : > { %s220_s22 = sshll.u32 %s210_s21, 4  ;;  %s791_s10 = smov [#allocation5]   ;;  %s221_s22 = int_to_ptr.vmem [resolvable:$true] %s220_s22 }
  0x26   : > { %s689_s25 = scalar_lea.vmem %s221_s22, 128  ;;  %s694_s12 = sshll.u32 %s791_s10, 4  ;;  %s695_s12 = int_to_ptr.vmem [resolvable:$false] %s694_s12 }
  0x27   : > { %p690_p12 = scmp.ne.s32.totalorder %s221_s22, %s689_s25  ;;  %s696_s14 = scalar_lea.vmem %s695_s12, 256 }
  0x28   : > { %p697_p1 = scmp.lt.s32.totalorder %s221_s22, %s695_s12  ;;  %p698_p2 = scmp.lt.s32.totalorder %s696_s14, %s689_s25 }
  0x29   : > { %p692_p6 = pnand %p690_p12, %p650_p3 }
  0x2a   : > { %p699_p4 = por %p698_p2, %p697_p1 }
  0x2b   : > { %p693_p7 = pneg %p692_p6 }
  0x2d   : > { %p700_p10 = pnand %p699_p4, %p693_p7 }
  0x2f   : > { %703 = shalt.err (!%p700_p10)
}
  0x30   : > { %580 = dma.hbm_to_vmem [thread:$0]  (!%p894_p0), %s218_s11, 128, %s221_s22, %s207_s24  }
  0x31   : > { %229 = sbr.rel (%p912_p5) target bundleno = 206 (0xce), region = 36  ;;  %s928_s5 = sand.u32 (!%p912_p5), 1, %s772_s16  }
  0x32   : > { %s931_s6 = sshll.u32 (!%p912_p5), %s928_s5, 3  ;;  %s232_s7 = scalar_lea.sflag (!%p912_p5), [#allocation3], %s928_s5 }
  0x33   : > { %s235_s8 = scalar_lea.vmem (!%p912_p5), [#allocation2], %s931_s6 }
  0x36   : > { %755 = dma.done.wait (%p867_p8), %s232_s7, 128  }
  0x37   : > { %757 = vsyncadd (%p867_p8), %s232_s7, 4294967168  ;;  %s241_s13 = scalar_lea.sflag [#allocation6], %s928_s5  ;;  %s244_s26 = scalar_lea.vmem [#allocation5], %s931_s6 }
  0x38   : > { %759 = dma.done.wait (%p867_p8), %s241_s13, 128  }
  0x39   : > { %761 = vsyncadd (%p867_p8), %s241_s13, 4294967168  ;;  %v792_v0 = vmov 0   ;;  %v277_v1 = vld [vmem:[%s1000_s0] sm:$0xf]  ;;  %v361_v4 = vld [vmem:[%s244_s26] sm:$0xff]  ;;  %vm291_vm0 = vcmask 1043456  }
  0x3a   : > { %637 = vset.pattern.permute.xlu0 %v792_v0  ;;  %v282_v2 = vld [vmem:[%s1001_s1] sm:$0xf]  ;;  %v363_v6 = vcombine.high %v361_v4, %v361_v4  ;;  %v365_v9 = vsel %vm291_vm0, %v361_v4, 0.0  ;;  %s567_s27 = sshll.u32 %s780_s18, 7  ;;  %s273_s24 = scalar_lea.vmem [#allocation7], %s931_s6 }
  0x3b   : > { %280 = vperm.xlu0 %637, %v277_v1   ;;  %v287_v3 = vld [vmem:[%s235_s8] sm:$0xff]  ;;  %v366_v13 = vrot.slane %v365_v9, 4  ;;  %s436_s25 = sshll.u32 %s273_s24, 4  ;;  %s434_s14 = scalar_lea.hbm %s1004_s4, %s567_s27  ;;  %s437_s25 = int_to_ptr.vmem [resolvable:$true] %s436_s25 }
  0x3c   : > { %v289_v5 = vcombine.high %v287_v3, %v287_v3  ;;  %v292_v7 = vsel %vm291_vm0, %v287_v3, 0.0  ;;  %v372_v10 = vsel %vm291_vm0, %v363_v6, 0.0  ;;  %s420_s7 = scalar_lea.sflag [#allocation4], %s928_s5  ;;  %s704_s8 = scalar_lea.vmem %s437_s25, 128 }
  0x3d   : > { %v293_v11 = vrot.slane %v292_v7, 4  ;;  %v373_v14 = vrot.slane %v372_v10, 4  ;;  %v367_v17 = vadd.f32 %v366_v13, %v365_v9  ;;  %p705_p8 = scmp.ne.s32.totalorder %s437_s25, %s704_s8  ;;  %s794_s13 = smov [#allocation7]  }
  0x3e   : > { %v299_v8 = vsel %vm291_vm0, %v289_v5, 0.0  ;;  %s708_s26 = sshll.u32 %s794_s13, 4  ;;  %s709_s26 = int_to_ptr.vmem [resolvable:$false] %s708_s26 }
  0x3f   : > { %285 = vperm.xlu0 %637, %v282_v2   ;;  %v300_v12 = vrot.slane %v299_v8, 4  ;;  %v294_v15 = vadd.f32 %v293_v11, %v292_v7  ;;  %v374_v18 = vadd.f32 %v373_v14, %v372_v10  ;;  %v368_v21 = vrot.slane %v367_v17, 2  ;;  %p706_p0 = pnand %p705_p8, %p871_p9  ;;  %s710_s18 = scalar_lea.vmem %s709_s26, 256 }
  0x40   : > { %p711_p13 = scmp.lt.s32.totalorder %s437_s25, %s709_s26  ;;  %p712_p5 = scmp.lt.s32.totalorder %s710_s18, %s704_s8 }
  0x41   : > { %v301_v16 = vadd.f32 %v300_v12, %v299_v8  ;;  %v295_v19 = vrot.slane %v294_v15, 2  ;;  %v375_v22 = vrot.slane %v374_v18, 2  ;;  %v369_v25 = vadd.f32 %v368_v21, %v367_v17  ;;  %p707_p3 = pneg %p706_p0 }
  0x42   : > { %v346_v21 = vlaneseq  ;;  %p713_p12 = por %p712_p5, %p711_p13 }
  0x43   : > { %v302_v20 = vrot.slane %v301_v16, 2  ;;  %v296_v23 = vadd.f32 %v295_v19, %v294_v15  ;;  %v376_v26 = vadd.f32 %v375_v22, %v374_v18  ;;  %v370_v29 = vrot.slane %v369_v25, 1 }
  0x44   : > { %v793_v19 = vmov 839922192   ;;  %p714_p6 = pnand %p713_p12, %p707_p3 }
  0x45   : > { %v303_v24 = vadd.f32 %v302_v20, %v301_v16  ;;  %v297_v27 = vrot.slane %v296_v23, 1  ;;  %v377_v30 = vrot.slane %v376_v26, 1  ;;  %v371_v33 = vadd.f32 %v370_v29, %v369_v25 }
  0x46   : > { %v344_v20 = vunpack.c.l.s4 %v793_v19 }
  0x47   : > { %v304_v28 = vrot.slane %v303_v24, 1  ;;  %v298_v31 = vadd.f32 %v297_v27, %v296_v23  ;;  %v378_v34 = vadd.f32 %v377_v30, %v376_v26  ;;  %v379_v37 = vmul.f32 0.25, %v371_v33 }
  0x48   : > { %v345_v25 = vunpack.c.0.s8 %v344_v20  ;;  %v347_v26 = vshrl.u32 %v346_v21, 7 }
  0x49   : > { %v305_v32 = vadd.f32 %v304_v28, %v303_v24  ;;  %v307_v35 = vmul.f32 0.25, %v298_v31  ;;  %v380_v38 = vmul.f32 0.25, %v378_v34 }
  0x4a   : > { %v348_v29 = vsub.s32 %v345_v25, %v347_v26 }
  0x4b   : > { %v308_v36 = vmul.f32 0.25, %v305_v32  ;;  %v383_v40 = vcombine.low %v379_v37, %v380_v38 }
  0x4d   : > { %v311_v39 = vcombine.low %v307_v35, %v308_v36  ;;  %v385_v42 = vsub.f32 %v361_v4, %v383_v40 }
  0x4f   : > { %v313_v41 = vsub.f32 %v287_v3, %v311_v39  ;;  %v386_v44 = vmul.f32 %v385_v42, %v385_v42 }
  0x51   : > { %v314_v43 = vmul.f32 %v313_v41, %v313_v41  ;;  %v388_v46 = vcombine.high %v386_v44, %v386_v44  ;;  %v390_v48 = vsel %vm291_vm0, %v386_v44, 0.0 }
  0x52   : > { %v391_v52 = vrot.slane %v390_v48, 4 }
  0x53   : > { %v316_v45 = vcombine.high %v314_v43, %v314_v43  ;;  %v318_v47 = vsel %vm291_vm0, %v314_v43, 0.0  ;;  %v397_v51 = vsel %vm291_vm0, %v388_v46, 0.0 }
  0x54   : > { %v319_v50 = vrot.slane %v318_v47, 4  ;;  %v398_v54 = vrot.slane %v397_v51, 4  ;;  %v392_v56 = vadd.f32 %v391_v52, %v390_v48 }
  0x55   : > { %v325_v49 = vsel %vm291_vm0, %v316_v45, 0.0 }
  0x56   : > { %v326_v53 = vrot.slane %v325_v49, 4  ;;  %v320_v55 = vadd.f32 %v319_v50, %v318_v47  ;;  %v399_v58 = vadd.f32 %v398_v54, %v397_v51  ;;  %v393_v60 = vrot.slane %v392_v56, 2 }
  0x58   : > { %v327_v57 = vadd.f32 %v326_v53, %v325_v49  ;;  %v321_v59 = vrot.slane %v320_v55, 2  ;;  %v400_v62 = vrot.slane %v399_v58, 2  ;;  %v394_v0 = vadd.f32 %v393_v60, %v392_v56 }
  0x5a   : > { %v328_v61 = vrot.slane %v327_v57, 2  ;;  %v322_v63 = vadd.f32 %v321_v59, %v320_v55  ;;  %v401_v2 = vadd.f32 %v400_v62, %v399_v58  ;;  %v395_v4 = vrot.slane %v394_v0, 1 }
  0x5c   : > { %v329_v1 = vadd.f32 %v328_v61, %v327_v57  ;;  %v323_v3 = vrot.slane %v322_v63, 1  ;;  %v402_v6 = vrot.slane %v401_v2, 1  ;;  %v396_v8 = vadd.f32 %v395_v4, %v394_v0 }
  0x5e   : > { %v330_v5 = vrot.slane %v329_v1, 1  ;;  %v324_v7 = vadd.f32 %v323_v3, %v322_v63  ;;  %v403_v10 = vadd.f32 %v402_v6, %v401_v2  ;;  %v404_v12 = vmul.f32 0.25, %v396_v8 }
  0x60   : > { %v331_v9 = vadd.f32 %v330_v5, %v329_v1  ;;  %v332_v11 = vmul.f32 0.25, %v324_v7  ;;  %v405_v14 = vmul.f32 0.25, %v403_v10  ;;  %v406_v16 = vadd.f32 1e-05, %v404_v12 }
  0x62   : > { %v333_v13 = vmul.f32 0.25, %v331_v9  ;;  %v334_v15 = vadd.f32 1e-05, %v332_v11  ;;  %v407_v18 = vadd.f32 1e-05, %v405_v14 }
  0x64   : > { %v335_v17 = vadd.f32 1e-05, %v333_v13  ;;  %640 = vrsqrt.f32 %v334_v15 }
  0x65   : > { %642 = vrsqrt.f32 %v406_v16 }
  0x66   : > { %644 = vrsqrt.f32 %v335_v17 }
  0x67   : > { %646 = vrsqrt.f32 %v407_v18 }
  0x71   : > { %v641_v22 = vpop.eup %640 }
  0x72   : > { %v643_v23 = vpop.eup %642 }
  0x73   : > { %v645_v24 = vpop.eup %644 }
  0x74   : > { %v647_v27 = vpop.eup %646  ;;  %v340_v28 = vcombine.low %v641_v22, %v645_v24 }
  0x75   : > { %v412_v30 = vcombine.low %v643_v23, %v647_v27 }
  0x76   : > { %v342_v32 = vmul.f32 %v340_v28, %v313_v41 }
  0x77   : > { %v414_v33 = vmul.f32 %v412_v30, %v385_v42 }
  0xb6   : > { %v281_v31 = vpop.permute.xlu0 %280 }
  0xb7   : > { %v349_v34 = vrot.slane %v281_v31, %v348_v29 }
  0xb9   : > { %v351_v36 = vmul.f32 %v349_v34, %v342_v32  ;;  %v415_v37 = vmul.f32 %v414_v33, %v349_v34 }
  0xba   : > { %v286_v35 = vpop.permute.xlu0 %285 }
  0xbb   : > { %v358_v38 = vrot.slane %v286_v35, %v348_v29 }
  0xbd   : > { %v360_v39 = vadd.f32 %v358_v38, %v351_v36  ;;  %v416_v40 = vadd.f32 %v415_v37, %v358_v38 }
  0xbf   : > { %v417_v43 = vadd.f32 %v416_v40, %v360_v39 }
  0xc1   : > { %418 = vst [vmem:[%s273_s24] sm:$0xff] %v417_v43 }
  0xc2   : > { %717 = shalt.err (!%p714_p6)
}
  0xc3   : > { %s718_s6 = scalar_lea.hbm %s434_s14, 128  ;;  %s722_s11 = scalar_lea.hbm %s1004_s4, 256 }
  0xc4   : > { %p719_p7 = scmp.ne.s32.totalorder %s434_s14, %s718_s6  ;;  %p723_p4 = scmp.lt.s32.totalorder %s434_s14, %s1004_s4 }
  0xc5   : > { %p724_p10 = scmp.lt.s32.totalorder %s722_s11, %s718_s6 }
  0xc6   : > { %p720_p1 = pnand %p719_p7, %p871_p9 }
  0xc7   : > { %p725_p8 = por %p724_p10, %p723_p4 }
  0xc8   : > { %p721_p2 = pneg %p720_p1 }
  0xca   : > { %p726_p0 = pnand %p725_p8, %p721_p2 }
  0xcc   : > { %729 = shalt.err (!%p726_p0)
}
  0xcd   : > { %572 = dma.vmem_to_hbm [thread:$0]  (%p871_p9), %s437_s25, 128, %s434_s14, %s420_s7  }
  0xce PF: > { %s448_s27 = sand.u32 1, %s768_s15   ;;  %p1011_p3 = scmp.ge.s32.totalorder %s788_s20, 2 }
  0xcf   : > { %s449_s24 = scalar_lea.sflag [#allocation4], %s448_s27 }
  0xd0   : > { %p582_p13 = pnand %p1011_p3, %p878_p11 }
  0xd2   : > { %p583_p5 = pneg %p582_p13 }
  0xd4   : > { %763 = dma.done.wait (%p583_p5), %s449_s24, 128  }
  0xd5   : > { %765 = vsyncadd (%p583_p5), %s449_s24, 4294967168  ;;  %s23_s20 = sadd.s32 1, %s788_s20   ;;  %s1012_s15 = smov %s772_s16 }
  0xd6   : > { %p20_p12 = scmp.ge.s32.totalorder %s23_s20, 4   ;;  %s1013_s16 = smov %s776_s17 }
  0xd7   : > { %s1014_s17 = smov %s876_s29  ;;  %s1015_s18 = smov %s784_s19 }
  0xd8   : > { %s1016_s19 = smov %s1018_s23  ;;  %22 = sbr.rel (!%p20_p12) target bundleno = 8 (0x8), region = 94 }
  0xdd   :  { %454 = vsyncpa [#allocation3], 1 }
  0xde   :  { %456 = vsyncpa [#allocation3 + $0x1], 1 }
  0xdf   :  { %457 = vsyncpa [#allocation6], 1 }
  0xe0   :  { %459 = vsyncpa [#allocation6 + $0x1], 1 }
  0xe1   :  { %460 = vsyncpa [#allocation4], 1 }
  0xe2   :  { %462 = vsyncpa [#allocation4 + $0x1], 1 }

</bundles_post_ra>
